<compile_context>
chip_gen: v6e
topology: v6e:2x2x1
jax: 0.10.0
libtpu: 0.0.40
codegen_flags: <defaults>
</compile_context>

<pallas_src>
import functools

import jax
import jax.numpy as jnp
from jax import lax
from jax.experimental import pallas as pl
from jax.experimental.pallas import tpu as pltpu

IN_FEATURES = 1000
FC1_SIZE = 8


def _round_up(x, m):
    return ((x + m - 1) // m) * m


def _linear_head_kernel(x_ref, w_ref, b_ref, o_ref, *, apply_sigmoid):
    # x_ref: (tm, K), w_ref: (N, K) native PyTorch layout, b_ref: (1, N).
    # Contract K of x against K of w (i.e. x @ w.T) on the MXU, fp32 accumulate.
    acc = lax.dot_general(
        x_ref[...], w_ref[...],
        dimension_numbers=(((1,), (1,)), ((), ())),
        preferred_element_type=jnp.float32,
        precision=lax.Precision.HIGHEST,        # fp32-faithful; kernel is mem-bound anyway
    )
    acc = acc + b_ref[...]                      # bias broadcast (1, N)
    if apply_sigmoid:                           # eval-mode path of the module
        acc = jax.nn.sigmoid(acc)               # EUP transcendental (free slot)
    o_ref[...] = acc.astype(o_ref.dtype)


def single_classification_head_forward(x, weight, bias, *, training=False, tm_max=2048):
    """x: (B, 1000) f32; weight: (fc1_size, 1000) f32 (PyTorch layout); bias: (fc1_size,)."""
    B, K = x.shape
    N, K_w = weight.shape
    assert K == K_w, (K, K_w)

    b_mat = bias.reshape(1, N)                  # (1, N) so it tiles as a 2-D block

    # Batch tile: multiple of 8 (sublane), capped at tm_max (~8 MB x-tile), and
    # sized so that whenever B > 8 the grid has >= 2 steps (lets v7x use both TCs).
    tm = max(8, min(tm_max, _round_up(pl.cdiv(B, 2), 8)))
    grid = (pl.cdiv(B, tm),)                    # ragged last block handled by Pallas

    apply_sigmoid = not training
    cost = pl.CostEstimate(
        flops=2 * B * K * N,
        transcendentals=(B * N) if apply_sigmoid else 0,
        bytes_accessed=4 * (B * K + N * K + B * N),
    )

    out = pl.pallas_call(
        functools.partial(_linear_head_kernel, apply_sigmoid=apply_sigmoid),
        out_shape=jax.ShapeDtypeStruct((B, N), x.dtype),
        grid=grid,
        in_specs=[
            pl.BlockSpec((tm, K), lambda i: (i, 0)),   # streamed batch tiles (double-buffered)
            pl.BlockSpec((N, K), lambda i: (0, 0)),    # weights resident in VMEM (~32 KB)
            pl.BlockSpec((1, N), lambda i: (0, 0)),    # bias resident in VMEM
        ],
        out_specs=pl.BlockSpec((tm, N), lambda i: (i, 0)),
        compiler_params=pltpu.CompilerParams(
            dimension_semantics=("parallel",),          # shard M tiles over v7x's 2 TCs
            vmem_limit_bytes=48 * 1024 * 1024,          # 2*8.2MB x bufs + scratch; < v7x 64 MiB
        ),
        cost_estimate=cost,
    )(x, weight, b_mat)

    return out


if __name__ == "__main__":
    key = jax.random.PRNGKey(0)
    kx, kw, kb = jax.random.split(key, 3)

    # Small shapes consistent with the module: batch=2, in_features=1000, fc1_size=8.
    B = 2
    x = jax.random.normal(kx, (B, IN_FEATURES), dtype=jnp.float32)

    # PyTorch nn.Linear default init: U(-1/sqrt(fan_in), 1/sqrt(fan_in)), fan_in = 1000.
    bound = 1.0 / jnp.sqrt(float(IN_FEATURES))
    weight = jax.random.uniform(kw, (FC1_SIZE, IN_FEATURES), jnp.float32, -bound, bound)
    bias = jax.random.uniform(kb, (FC1_SIZE,), jnp.float32, -bound, bound)

    # Eval-mode path (sigmoid) and training-mode path (raw linear), like the module.
    out_eval = jax.block_until_ready(
        single_classification_head_forward(x, weight, bias, training=False))
    out_train = jax.block_until_ready(
        single_classification_head_forward(x, weight, bias, training=True))

    # Pure-JAX reference at matching (HIGHEST) matmul precision.
    ref_lin = jnp.dot(x, weight.T, precision=lax.Precision.HIGHEST) + bias
    ref_eval = jax.nn.sigmoid(ref_lin)

    assert out_eval.shape == (B, FC1_SIZE), out_eval.shape
    assert out_train.shape == (B, FC1_SIZE), out_train.shape
    assert bool(jnp.all(jnp.isfinite(out_eval)))
    assert bool(jnp.all(jnp.isfinite(out_train)))
    assert bool(jnp.allclose(out_train, ref_lin, atol=1e-5, rtol=1e-5))
    assert bool(jnp.allclose(out_eval, ref_eval, atol=1e-5, rtol=1e-5))
    print("KERNEL_OK")
</pallas_src>

<mosaic_0001>
module attributes {stable_mosaic.version = 11 : i64} {
  func.func @_linear_head_kernel(%arg0: i32, %arg1: memref<8x1000xf32, #tpu.memory_space<vmem>>, %arg2: memref<8x1000xf32, #tpu.memory_space<vmem>>, %arg3: memref<1x8xf32, #tpu.memory_space<vmem>>, %arg4: memref<8x8xf32, #tpu.memory_space<vmem>>) attributes {dimension_semantics = [#tpu.dimension_semantics<parallel>], iteration_bounds = array<i64: 1>, scalar_prefetch = 0 : i64, scratch_operands = 0 : i64, tpu.core_type = #tpu.core_type<tc>, window_params = [{transform_indices = @transform_0, window_bounds = array<i64: 8, 1000>}, {pipeline_mode = #tpu.pipeline_mode<synchronous>, transform_indices = @transform_1, window_bounds = array<i64: 8, 1000>}, {pipeline_mode = #tpu.pipeline_mode<synchronous>, transform_indices = @transform_2, window_bounds = array<i64: 1, 8>}, {transform_indices = @transform_3, window_bounds = array<i64: 8, 8>}]} {
    %c0 = arith.constant 0 : index
    %c0_0 = arith.constant 0 : index
    %0 = vector.load %arg1[%c0, %c0_0] : memref<8x1000xf32, #tpu.memory_space<vmem>>, vector<8x1000xf32>
    %c0_1 = arith.constant 0 : index
    %c0_2 = arith.constant 0 : index
    %1 = vector.load %arg2[%c0_1, %c0_2] : memref<8x1000xf32, #tpu.memory_space<vmem>>, vector<8x1000xf32>
    %cst = arith.constant dense<0.000000e+00> : vector<8x8xf32>
    %2 = tpu.matmul %0, %1, %cst {dimension_numbers = #tpu.dot_dimension_numbers<[1], [1], [0], [0], [0, 0, 1, 0], [], []>, precision = #tpu.contract_precision<fp32>} : vector<8x1000xf32>, vector<8x1000xf32>, vector<8x8xf32> -> vector<8x8xf32>
    %c0_3 = arith.constant 0 : index
    %c0_4 = arith.constant 0 : index
    %3 = vector.load %arg3[%c0_3, %c0_4] : memref<1x8xf32, #tpu.memory_space<vmem>>, vector<1x8xf32>
    %4 = vector.broadcast %3 : vector<1x8xf32> to vector<8x8xf32>
    %5 = arith.addf %2, %4 : vector<8x8xf32>
    %6 = arith.negf %5 : vector<8x8xf32>
    %7 = math.exp %6 : vector<8x8xf32>
    %cst_5 = arith.constant 1.000000e+00 : f32
    %8 = vector.broadcast %cst_5 : f32 to vector<8x8xf32>
    %9 = arith.addf %8, %7 : vector<8x8xf32>
    %10 = arith.divf %8, %9 : vector<8x8xf32>
    %c0_6 = arith.constant 0 : index
    %c0_7 = arith.constant 0 : index
    %11 = vector.load %arg4[%c0_6, %c0_7] : memref<8x8xf32, #tpu.memory_space<vmem>>, vector<8x8xf32>
    tpu.vector_store %arg4[%c0_6, %c0_7], %10 {strides = array<i32>} : memref<8x8xf32, #tpu.memory_space<vmem>>, vector<8x8xf32>,
    return
  }
  func.func @transform_0(%arg0: i32) -> (i32, i32) {
    %c0_i32 = arith.constant 0 : i32
    %c0_i32_0 = arith.constant 0 : i32
    return %arg0, %c0_i32 : i32, i32
  }
  func.func @transform_1(%arg0: i32) -> (i32, i32) {
    %c0_i32 = arith.constant 0 : i32
    %c0_i32_0 = arith.constant 0 : i32
    %c0_i32_1 = arith.constant 0 : i32
    return %c0_i32, %c0_i32_0 : i32, i32
  }
  func.func @transform_2(%arg0: i32) -> (i32, i32) {
    %c0_i32 = arith.constant 0 : i32
    %c0_i32_0 = arith.constant 0 : i32
    %c0_i32_1 = arith.constant 0 : i32
    return %c0_i32, %c0_i32_0 : i32, i32
  }
  func.func @transform_3(%arg0: i32) -> (i32, i32) {
    %c0_i32 = arith.constant 0 : i32
    %c0_i32_0 = arith.constant 0 : i32
    return %arg0, %c0_i32 : i32, i32
  }
}

</mosaic_0001>

<bundles_post_ra>
// kernel: tpu_custom_call.1
= control target key start
LH: loop header
LB: loop body
LE: loop exit
PB: predicated region body
PF: predicated region fallthrough
CT: control target
= control target key end

     0   :  { %8 = vsyncpa [#allocation3], 0  ;;  %s2395_s0 = inlined_call_operand.hbm [shape: f32[2,1000], index: 0, kind: input, shape index: {}]   ;;  %s2396_s1 = inlined_call_operand.hbm [shape: f32[8,1000], index: 1, kind: input, shape index: {}]   ;;  %s2397_s2 = inlined_call_operand.vmem [shape: f32[1,8], index: 2, kind: input, shape index: {}]   ;;  %s2398_s3 = inlined_call_operand.hbm [shape: f32[2,8], index: 3, kind: output, shape index: {}]  }
   0x1   :  { %9 = vsyncpa [#allocation6], 0 }
   0x2   :  { %10 = vsyncpa [#allocation4], 0 }
   0x3   :  { %15 = vsyncadd [#allocation3], 768  ;;  %s2163_s12 = smov [#allocation2]  }
   0x4   :  { %s16_s13 = sshll.u32 %s2163_s12, 4  ;;  %s17_s13 = int_to_ptr.vmem [resolvable:$true] %s16_s13 }
   0x5   :  { %s2105_s14 = scalar_lea.vmem %s17_s13, 256  ;;  %s2109_s15 = scalar_lea.vmem %s17_s13, 1024 }
   0x6   :  { %p2106_p0 = scmp.ne.s32.totalorder %s17_s13, %s2105_s14  ;;  %p2110_p1 = scmp.lt.s32.totalorder %s17_s13, %s17_s13 }
   0x7   :  { %p2111_p2 = scmp.lt.s32.totalorder %s2109_s15, %s2105_s14 }
   0x9   :  { %p2112_p3 = por %p2111_p2, %p2110_p1 }
   0xb   :  { %p2113_p4 = pnand %p2112_p3, %p2106_p0 }
   0xd   :  { %2116 = shalt.err (!%p2113_p4)
}
   0xe   :  { %s2164_s16 = smov 256   ;;  %s2165_s17 = smov 16  }
   0xf   :  { %22 = dma.hbm_to_vmem [thread:$0]  %s2395_s0, 256, %s17_s13, [#allocation3], %s2164_s16, %s2164_s16, %s2165_s17  }
  0x10   :  { %s2166_s20 = smov [#allocation5]  }
  0x11   :  { %s29_s21 = sshll.u32 %s2166_s20, 4  ;;  %s30_s21 = int_to_ptr.vmem [resolvable:$true] %s29_s21 }
  0x12   :  { %s2125_s22 = scalar_lea.vmem %s30_s21, 1024  ;;  %p2130_p6 = scmp.lt.s32.totalorder %s30_s21, %s30_s21 }
  0x13   :  { %p2126_p5 = scmp.ne.s32.totalorder %s30_s21, %s2125_s22  ;;  %p2131_p7 = scmp.lt.s32.totalorder %s2125_s22, %s2125_s22 }
  0x15   :  { %p2132_p8 = por %p2131_p7, %p2130_p6 }
  0x17   :  { %p2133_p9 = pnand %p2132_p8, %p2126_p5 }
  0x19   :  { %2136 = shalt.err (!%p2133_p9)
}
  0x1a   :  { %32 = dma.hbm_to_vmem [thread:$0]  %s2396_s1, 1024, %s30_s21, [#allocation6]  }
  0x1b   :  { %2157 = dma.done.wait [#allocation3], 1024  }
  0x1c   :  { %2158 = vsyncadd [#allocation3], 4294966272 }
  0x1d   :  { %2159 = dma.done.wait [#allocation6], 1024  }
  0x1e   :  { %2160 = vsyncadd [#allocation6], 4294966272  ;;  %v79_v0 = vlaneseq  ;;  %v2167_v1 = vmov 1983009808   ;;  %v50_v5 = vld [vmem:[#allocation5 + $0x8] sm:$0xff]  ;;  %v49_v6 = vld [vmem:[#allocation5] sm:$0xff] }
  0x1f   :  { %v77_v2 = vunpack.c.l.s4 %v2167_v1  ;;  %v2199_v8 = vand.u32 4294901760, %v50_v5  ;;  %v2201_v9 = vand.u32 4294901760, %v49_v6  ;;  %v2081_v10 = vld [vmem:[#allocation2] ss:$16 sps:$4 sm:$0xff]   ;;  %v2083_v11 = vld [vmem:[#allocation2 + $0x4] ss:$16 sps:$4 sm:$0xff]  }
  0x20   :  { %v80_v4 = vshrl.u32 %v79_v0, 7  ;;  %v2084_v12 = vld [vmem:[#allocation2 + $0x20] ss:$16 sps:$4 sm:$0xff]   ;;  %v2086_v15 = vld [vmem:[#allocation2 + $0x24] ss:$16 sps:$4 sm:$0xff]   ;;  %v52_v16 = vld [vmem:[#allocation5 + $0x18] sm:$0xff] }
  0x21   :  { %v78_v3 = vunpack.c.0.s8 %v77_v2  ;;  %188 = vmatprep.subr.mxu0 %v2199_v8  ;;  %v2205_v13 = vsub.f32 %v50_v5, %v2199_v8  ;;  %v2208_v14 = vsub.f32 %v49_v6, %v2201_v9  ;;  %v51_v17 = vld [vmem:[#allocation5 + $0x10] sm:$0xff]  ;;  %v2213_v20 = vand.u32 4294901760, %v52_v16  ;;  %v2087_v42 = vld [vmem:[#allocation2 + $0x8] ss:$16 sps:$4 sm:$0xff]   ;;  %v53_v57 = vld [vmem:[#allocation5 + $0x20] sm:$0xff] }
  0x22   :  { %190 = vmatpush1.xpose.msra.mxu0 %v2201_v9  ;;  %v2215_v21 = vand.u32 4294901760, %v51_v17  ;;  %v2089_v43 = vld [vmem:[#allocation2 + $0x28] ss:$16 sps:$4 sm:$0xff]   ;;  %v2091_v62 = vld [vmem:[#allocation2 + $0xc] ss:$16 sps:$4 sm:$0xff]   ;;  %v2268_v2 = vand.u32 4294901760, %v53_v57 }
  0x23   :  { %v2197_v7 = vsub.s32 %v78_v3, %v80_v4  ;;  %v271_v22 = vand.u32 4294901760, %v2205_v13  ;;  %v277_v23 = vand.u32 4294901760, %v2208_v14  ;;  %353 = vmatprep.subr.mxu0 %v2205_v13  ;;  %v2223_v28 = vsub.f32 %v52_v16, %v2213_v20  ;;  %v54_v48 = vld [vmem:[#allocation5 + $0x28] sm:$0xff] }
  0x24   :  { %v2236_v35 = vsub.f32 %v51_v17, %v2215_v21  ;;  %v2260_v56 = vand.u32 4294901760, %v54_v48  ;;  %v2092_v63 = vld [vmem:[#allocation2 + $0x2c] ss:$16 sps:$4 sm:$0xff]   ;;  %vm151_vm0 = vcmask 850944   ;;  %v2285_v16 = vsub.f32 %v53_v57, %v2268_v2  ;;  %v2071_v57 = vld [vmem:[%s2397_s2] ss:$0 sm:$0xff] }
  0x25   :  { %v82_v18 = vrot.slane %v2081_v10, %v2197_v7  ;;  %v96_v19 = vrot.slane %v2084_v12, %v2197_v7  ;;  %v89_v24 = vrot.slane %v2083_v11, %v2197_v7  ;;  %v103_v25 = vrot.slane %v2086_v15, %v2197_v7  ;;  %v56_v10 = vld [vmem:[#allocation5 + $0x38] sm:$0xff] }
  0x26   :  { %v272_v29 = vsub.f32 %v2205_v13, %v271_v22  ;;  %v278_v30 = vsub.f32 %v2208_v14, %v277_v23  ;;  %v743_v38 = vand.u32 4294901760, %v2223_v28  ;;  %v749_v50 = vand.u32 4294901760, %v2236_v35 }
  0x27   :  { %v105_v26 = vcombine.high %v82_v18, %v96_v19  ;;  %v104_v27 = vcombine.low %v82_v18, %v96_v19  ;;  %v107_v31 = vcombine.high %v89_v24, %v103_v25  ;;  %v106_v32 = vcombine.low %v89_v24, %v103_v25 }
  0x28   :  { %v273_v36 = vand.u32 4294901760, %v272_v29  ;;  %v279_v37 = vand.u32 4294901760, %v278_v30  ;;  %v744_v49 = vsub.f32 %v2223_v28, %v743_v38  ;;  %v118_v53 = vrot.slane %v2087_v42, %v2197_v7 }
  0x29   :  { %v2231_v33 = vand.u32 4294901760, %v105_v26  ;;  %v2233_v34 = vand.u32 4294901760, %v104_v27  ;;  %v2239_v39 = vand.u32 4294901760, %v107_v31  ;;  %v2244_v44 = vand.u32 4294901760, %v106_v32 }
  0x2a   :  { %274 = vmatprep.subr.mxu1 %v273_v36  ;;  %v132_v54 = vrot.slane %v2089_v43, %v2197_v7  ;;  %v745_v0 = vand.u32 4294901760, %v744_v49  ;;  %v750_v1 = vsub.f32 %v2236_v35, %v749_v50  ;;  %v2272_v4 = vsub.f32 %v54_v48, %v2260_v56 }
  0x2b   :  { %v224_v40 = vsub.f32 %v105_v26, %v2231_v33  ;;  %314 = vmatprep.mubr.f32.mxu1 %v2231_v33  ;;  %v230_v41 = vsub.f32 %v104_v27, %v2233_v34  ;;  %280 = vmatpush1.xpose.msra.mxu1 %v279_v37  ;;  %v2247_v47 = vsub.f32 %v107_v31, %v2239_v39  ;;  %v155_v19 = vsel %vm151_vm0, %v56_v10, 0  ;;  %v55_v27 = vld [vmem:[#allocation5 + $0x30] sm:$0xff] }
  0x2c   :  { %430 = vmatprep.subr.mxu1 %v2199_v8  ;;  %v2258_v55 = vsub.f32 %v106_v32, %v2244_v44  ;;  %v141_v61 = vcombine.high %v118_v53, %v132_v54  ;;  %v140_v5 = vcombine.low %v118_v53, %v132_v54  ;;  %v125_v11 = vrot.slane %v2091_v62, %v2197_v7 }
  0x2d   :  { %v225_v45 = vand.u32 4294901760, %v224_v40  ;;  %v231_v46 = vand.u32 4294901760, %v230_v41  ;;  %v697_v60 = vand.u32 4294901760, %v2247_v47  ;;  %v139_v12 = vrot.slane %v2092_v63, %v2197_v7 }
  0x2e   :  { %316 = vmatmul.mubr.f32.vlgmr.msra.gmra.mxu1 %v2233_v34  ;;  %v703_v3 = vand.u32 4294901760, %v2258_v55  ;;  %v751_v15 = vand.u32 4294901760, %v750_v1  ;;  %v1215_v13 = vand.u32 4294901760, %v2272_v4  ;;  %v2289_v18 = vand.u32 4294901760, %v140_v5 }
  0x2f   :  { %v226_v51 = vsub.f32 %v224_v40, %v225_v45  ;;  %v232_v52 = vsub.f32 %v230_v41, %v231_v46  ;;  %432 = vmatpush1.xpose.msra.mxu1 %v2201_v9  ;;  %468 = vmatprep.mubr.f32.mxu1 %v225_v45  ;;  %v698_v6 = vsub.f32 %v2247_v47, %v697_v60  ;;  %v1221_v24 = vand.u32 4294901760, %v2285_v16 }
  0x30   :  { %586 = vmatprep.subr.mxu1 %v2199_v8  ;;  %v2276_v8 = vand.u32 4294901760, %v141_v61  ;;  %v704_v17 = vsub.f32 %v2258_v55, %v703_v3  ;;  %v2308_v25 = vsub.f32 %v140_v5, %v2289_v18  ;;  %v2310_v26 = vand.u32 4294901760, %v155_v19 }
  0x31   :  { %v227_v58 = vand.u32 4294901760, %v226_v51  ;;  %v233_v59 = vand.u32 4294901760, %v232_v52  ;;  %v699_v7 = vand.u32 4294901760, %v698_v6  ;;  %v1222_v31 = vsub.f32 %v2285_v16, %v1221_v24 }
  0x32   :  { %472 = vmatmul.mubr.f32.vlgmr.msra.gmra.mxu1 %v231_v46  ;;  %v2321_v32 = vand.u32 4294901760, %v55_v27  ;;  %v2326_v36 = vsub.f32 %v155_v19, %v2310_v26  ;;  %v142_v37 = vcombine.low %v125_v11, %v139_v12  ;;  %vm2051_vm1 = vcmask 64512  }
  0x33   :  { %228 = vmatprep.mubr.f32.mxu0 %v227_v58  ;;  %588 = vmatpush1.xpose.msra.mxu1 %v2201_v9  ;;  %v2295_v9 = vsub.f32 %v141_v61, %v2276_v8 }
  0x34   :  { %234 = vmatmul.mubr.f32.vlgmr.msra.gmra.mxu0 %v233_v59  ;;  %622 = vmatprep.mubr.f32.mxu1 %v2231_v33  ;;  %v2338_v42 = vsub.f32 %v55_v27, %v2321_v32  ;;  %v1687_v45 = vand.u32 4294901760, %v2326_v36  ;;  %v2343_v46 = vand.u32 4294901760, %v142_v37 }
  0x35   :  { %356 = vmatpush1.xpose.msra.mxu0 %v2208_v14  ;;  %391 = vmatprep.mubr.f32.mxu0 %v224_v40  ;;  %v705_v14 = vand.u32 4294901760, %v704_v17  ;;  %v1169_v29 = vand.u32 4294901760, %v2295_v9 }
  0x36   :  { %510 = vmatprep.subr.mxu0 %v271_v22  ;;  %746 = vmatprep.subr.mxu1 %v745_v0  ;;  %v143_v22 = vcombine.high %v125_v11, %v139_v12 }
  0x37   :  { %624 = vmatmul.mubr.f32.vlgmr.msra.gmra.mxu1 %v2233_v34  ;;  %v1170_v40 = vsub.f32 %v2295_v9, %v1169_v29 }
  0x38   :  { %394 = vmatmul.mubr.f32.vlgmr.msra.gmra.mxu0 %v230_v41  ;;  %752 = vmatpush1.xpose.msra.mxu1 %v751_v15  ;;  %v152_v30 = vsel %vm151_vm0, %v143_v22, 0 }
  0x39   :  { %514 = vmatpush1.xpose.msra.mxu0 %v277_v23  ;;  %548 = vmatprep.mubr.f32.mxu0 %v2231_v33  ;;  %v1216_v23 = vsub.f32 %v2272_v4, %v1215_v13  ;;  %v2331_v41 = vand.u32 4294901760, %v152_v30 }
  0x3a   :  { %660 = vmatprep.subr.mxu0 %v2213_v20  ;;  %786 = vmatprep.mubr.f32.mxu1 %v2239_v39 }
  0x3b   :  { %902 = vmatprep.subr.mxu1 %v2213_v20  ;;  %788 = vmatmul.mubr.f32.vlgmr.msra.gmra.mxu1 %v2244_v44  ;;  %v1217_v33 = vand.u32 4294901760, %v1216_v23 }
  0x3c   :  { %550 = vmatmul.mubr.f32.vlgmr.msra.gmra.mxu0 %v2233_v34  ;;  %904 = vmatpush1.xpose.msra.mxu1 %v2215_v21  ;;  %v1175_v34 = vand.u32 4294901760, %v2308_v25 }
  0x3d   :  { %662 = vmatpush1.xpose.msra.mxu0 %v2215_v21  ;;  %700 = vmatprep.mubr.f32.mxu0 %v699_v7 }
  0x3e   :  { %825 = vmatprep.subr.mxu0 %v2223_v28  ;;  %940 = vmatprep.mubr.f32.mxu1 %v697_v60  ;;  %v1176_v43 = vsub.f32 %v2308_v25, %v1175_v34  ;;  %v1640_v28 = vsub.f32 %v152_v30, %v2331_v41 }
  0x3f   :  { %1058 = vmatprep.subr.mxu1 %v2213_v20  ;;  %944 = vmatmul.mubr.f32.vlgmr.msra.gmra.mxu1 %v703_v3  ;;  %v1223_v20 = vand.u32 4294901760, %v1222_v31 }
  0x40   :  { %706 = vmatmul.mubr.f32.vlgmr.msra.gmra.mxu0 %v705_v14  ;;  %1060 = vmatpush1.xpose.msra.mxu1 %v2215_v21  ;;  %v1171_v21 = vand.u32 4294901760, %v1170_v40  ;;  %v1641_v48 = vand.u32 4294901760, %v1640_v28 }
  0x41   :  { %828 = vmatpush1.xpose.msra.mxu0 %v2236_v35  ;;  %863 = vmatprep.mubr.f32.mxu0 %v2247_v47  ;;  %v1177_v47 = vand.u32 4294901760, %v1176_v43  ;;  %v1688_v35 = vsub.f32 %v2326_v36, %v1687_v45 }
  0x42   :  { %982 = vmatprep.subr.mxu0 %v743_v38  ;;  %1094 = vmatprep.mubr.f32.mxu1 %v2239_v39  ;;  %v1693_v38 = vand.u32 4294901760, %v2338_v42  ;;  %v1642_v51 = vsub.f32 %v1640_v28, %v1641_v48 }
  0x43   :  { %1218 = vmatprep.subr.mxu1 %v1217_v33  ;;  %1096 = vmatmul.mubr.f32.vlgmr.msra.gmra.mxu1 %v2244_v44  ;;  %v1689_v49 = vand.u32 4294901760, %v1688_v35 }
  0x44   :  { %866 = vmatmul.mubr.f32.vlgmr.msra.gmra.mxu0 %v2258_v55  ;;  %1224 = vmatpush1.xpose.msra.mxu1 %v1223_v20  ;;  %v1643_v54 = vand.u32 4294901760, %v1642_v51 }
  0x45   :  { %986 = vmatpush1.xpose.msra.mxu0 %v749_v50  ;;  %1020 = vmatprep.mubr.f32.mxu0 %v2239_v39  ;;  %v1646_v39 = vsub.f32 %v142_v37, %v2343_v46 }
  0x46   :  { %1132 = vmatprep.subr.mxu0 %v2260_v56  ;;  %1258 = vmatprep.mubr.f32.mxu1 %v2276_v8 }
  0x47   :  { %1374 = vmatprep.subr.mxu1 %v2260_v56  ;;  %1260 = vmatmul.mubr.f32.vlgmr.msra.gmra.mxu1 %v2289_v18  ;;  %v1647_v50 = vand.u32 4294901760, %v1646_v39 }
  0x48   :  { %1022 = vmatmul.mubr.f32.vlgmr.msra.gmra.mxu0 %v2244_v44  ;;  %1376 = vmatpush1.xpose.msra.mxu1 %v2268_v2  ;;  %v1694_v44 = vsub.f32 %v2338_v42, %v1693_v38 }
  0x49   :  { %1134 = vmatpush1.xpose.msra.mxu0 %v2268_v2  ;;  %1172 = vmatprep.mubr.f32.mxu0 %v1171_v21  ;;  %v1648_v53 = vsub.f32 %v1646_v39, %v1647_v50 }
  0x4a   :  { %1297 = vmatprep.subr.mxu0 %v2272_v4  ;;  %1412 = vmatprep.mubr.f32.mxu1 %v1169_v29  ;;  %v1695_v52 = vand.u32 4294901760, %v1694_v44 }
  0x4b   :  { %1530 = vmatprep.subr.mxu1 %v2260_v56  ;;  %1416 = vmatmul.mubr.f32.vlgmr.msra.gmra.mxu1 %v1175_v34  ;;  %v1649_v55 = vand.u32 4294901760, %v1648_v53 }
  0x4c   :  { %1178 = vmatmul.mubr.f32.vlgmr.msra.gmra.mxu0 %v1177_v47  ;;  %1532 = vmatpush1.xpose.msra.mxu1 %v2268_v2 }
  0x4d   :  { %1300 = vmatpush1.xpose.msra.mxu0 %v2285_v16  ;;  %1335 = vmatprep.mubr.f32.mxu0 %v2295_v9 }
  0x4e   :  { %1454 = vmatprep.subr.mxu0 %v1215_v13  ;;  %1566 = vmatprep.mubr.f32.mxu1 %v2276_v8 }
  0x4f   :  { %1690 = vmatprep.subr.mxu1 %v1689_v49  ;;  %1568 = vmatmul.mubr.f32.vlgmr.msra.gmra.mxu1 %v2289_v18 }
  0x50   :  { %1338 = vmatmul.mubr.f32.vlgmr.msra.gmra.mxu0 %v2308_v25  ;;  %1696 = vmatpush1.xpose.msra.mxu1 %v1695_v52 }
  0x51   :  { %1458 = vmatpush1.xpose.msra.mxu0 %v1221_v24  ;;  %1492 = vmatprep.mubr.f32.mxu0 %v2276_v8 }
  0x52   :  { %1604 = vmatprep.subr.mxu0 %v2310_v26  ;;  %1730 = vmatprep.mubr.f32.mxu1 %v2331_v41 }
  0x53   :  { %1846 = vmatprep.subr.mxu1 %v2310_v26  ;;  %1732 = vmatmul.mubr.f32.vlgmr.msra.gmra.mxu1 %v2343_v46 }
  0x54   :  { %1494 = vmatmul.mubr.f32.vlgmr.msra.gmra.mxu0 %v2289_v18  ;;  %1848 = vmatpush1.xpose.msra.mxu1 %v2321_v32 }
  0x55   :  { %1606 = vmatpush1.xpose.msra.mxu0 %v2321_v32  ;;  %1644 = vmatprep.mubr.f32.mxu0 %v1643_v54 }
  0x56   :  { %1769 = vmatprep.subr.mxu0 %v2326_v36  ;;  %1884 = vmatprep.mubr.f32.mxu1 %v1641_v48 }
  0x57   :  { %2002 = vmatprep.subr.mxu1 %v2310_v26  ;;  %1888 = vmatmul.mubr.f32.vlgmr.msra.gmra.mxu1 %v1647_v50 }
  0x58   :  { %1650 = vmatmul.mubr.f32.vlgmr.msra.gmra.mxu0 %v1649_v55  ;;  %2004 = vmatpush1.xpose.msra.mxu1 %v2321_v32 }
  0x59   :  { %1772 = vmatpush1.xpose.msra.mxu0 %v2338_v42  ;;  %1807 = vmatprep.mubr.f32.mxu0 %v1640_v28 }
  0x5a   :  { %1926 = vmatprep.subr.mxu0 %v1687_v45  ;;  %2038 = vmatprep.mubr.f32.mxu1 %v2331_v41 }
  0x5b   :  { %2040 = vmatmul.mubr.f32.vlgmr.msra.gmra.mxu1 %v2343_v46 }
  0x5c   :  { %1810 = vmatmul.mubr.f32.vlgmr.msra.gmra.mxu0 %v1646_v39 }
  0x5d   :  { %1930 = vmatpush1.xpose.msra.mxu0 %v1693_v38  ;;  %1964 = vmatprep.mubr.f32.mxu0 %v2331_v41 }
  0x60   :  { %1966 = vmatmul.mubr.f32.vlgmr.msra.gmra.mxu0 %v2343_v46 }
  0xee   :  { %v317_v56 = vpop.f32.mrf.mxu1 }
  0xf0   :  { %v319_v58 = vpop.f32.mrf.mxu1 }
  0xf2   :  { %v473_v60 = vpop.f32.mrf.mxu1 }
  0xf4   :  { %v235_v59 = vpop.f32.mrf.mxu0  ;;  %v475_v63 = vpop.f32.mrf.mxu1 }
  0xf5   :  { %v236_v61 = vadd.f32 %v2071_v57, %v235_v59 }
  0xf6   :  { %v237_v62 = vpop.f32.mrf.mxu0 }
  0xf7   :  { %v318_v0 = vadd.f32 %v317_v56, %v236_v61  ;;  %v625_v4 = vpop.f32.mrf.mxu1 }
  0xf8   :  { %v395_v1 = vpop.f32.mrf.mxu0 }
  0xf9   :  { %v396_v2 = vadd.f32 %v395_v1, %v318_v0  ;;  %v627_v8 = vpop.f32.mrf.mxu1 }
  0xfa   :  { %v397_v3 = vpop.f32.mrf.mxu0 }
  0xfb   :  { %v474_v5 = vadd.f32 %v473_v60, %v396_v2  ;;  %v789_v12 = vpop.f32.mrf.mxu1 }
  0xfc   :  { %v551_v6 = vpop.f32.mrf.mxu0 }
  0xfd   :  { %v552_v10 = vadd.f32 %v551_v6, %v474_v5  ;;  %v791_v17 = vpop.f32.mrf.mxu1 }
  0xfe   :  { %v553_v11 = vpop.f32.mrf.mxu0 }
  0xff   :  { %v626_v15 = vadd.f32 %v625_v4, %v552_v10  ;;  %v945_v7 = vpop.f32.mrf.mxu1 }
 0x100   :  { %v707_v16 = vpop.f32.mrf.mxu0 }
 0x101   :  { %v708_v13 = vadd.f32 %v707_v16, %v626_v15  ;;  %v947_v22 = vpop.f32.mrf.mxu1 }
 0x102   :  { %v709_v18 = vpop.f32.mrf.mxu0 }
 0x103   :  { %v790_v9 = vadd.f32 %v789_v12, %v708_v13  ;;  %v1097_v23 = vpop.f32.mrf.mxu1 }
 0x104   :  { %v867_v19 = vpop.f32.mrf.mxu0 }
 0x105   :  { %v868_v24 = vadd.f32 %v867_v19, %v790_v9  ;;  %v1099_v27 = vpop.f32.mrf.mxu1 }
 0x106   :  { %v869_v14 = vpop.f32.mrf.mxu0 }
 0x107   :  { %v946_v25 = vadd.f32 %v945_v7, %v868_v24  ;;  %v1261_v31 = vpop.f32.mrf.mxu1 }
 0x108   :  { %v1023_v26 = vpop.f32.mrf.mxu0 }
 0x109   :  { %v1024_v29 = vadd.f32 %v1023_v26, %v946_v25  ;;  %v1263_v34 = vpop.f32.mrf.mxu1 }
 0x10a   :  { %v1025_v30 = vpop.f32.mrf.mxu0 }
 0x10b   :  { %v1098_v32 = vadd.f32 %v1097_v23, %v1024_v29  ;;  %v1417_v40 = vpop.f32.mrf.mxu1 }
 0x10c   :  { %v1179_v33 = vpop.f32.mrf.mxu0 }
 0x10d   :  { %v1180_v36 = vadd.f32 %v1179_v33, %v1098_v32  ;;  %v1419_v42 = vpop.f32.mrf.mxu1 }
 0x10e   :  { %v1181_v37 = vpop.f32.mrf.mxu0 }
 0x10f   :  { %v1262_v41 = vadd.f32 %v1261_v31, %v1180_v36  ;;  %v1569_v46 = vpop.f32.mrf.mxu1 }
 0x110   :  { %v1339_v20 = vpop.f32.mrf.mxu0 }
 0x111   :  { %v1340_v43 = vadd.f32 %v1339_v20, %v1262_v41  ;;  %v1571_v38 = vpop.f32.mrf.mxu1 }
 0x112   :  { %v1341_v45 = vpop.f32.mrf.mxu0 }
 0x113   :  { %v1418_v21 = vadd.f32 %v1417_v40, %v1340_v43  ;;  %v1733_v39 = vpop.f32.mrf.mxu1 }
 0x114   :  { %v1495_v28 = vpop.f32.mrf.mxu0 }
 0x115   :  { %v1496_v47 = vadd.f32 %v1495_v28, %v1418_v21  ;;  %v1735_v49 = vpop.f32.mrf.mxu1 }
 0x116   :  { %v1497_v35 = vpop.f32.mrf.mxu0 }
 0x117   :  { %v1570_v48 = vadd.f32 %v1569_v46, %v1496_v47  ;;  %v1889_v52 = vpop.f32.mrf.mxu1 }
 0x118   :  { %v1651_v44 = vpop.f32.mrf.mxu0 }
 0x119   :  { %v1652_v50 = vadd.f32 %v1651_v44, %v1570_v48  ;;  %v1891_v55 = vpop.f32.mrf.mxu1 }
 0x11a   :  { %v1653_v51 = vpop.f32.mrf.mxu0 }
 0x11b   :  { %v1734_v53 = vadd.f32 %v1733_v39, %v1652_v50  ;;  %v2041_v58 = vpop.f32.mrf.mxu1 }
 0x11c   :  { %v1811_v54 = vpop.f32.mrf.mxu0 }
 0x11d   :  { %v1812_v56 = vadd.f32 %v1811_v54, %v1734_v53  ;;  %v2043_v61 = vpop.f32.mrf.mxu1 }
 0x11e   :  { %v1813_v57 = vpop.f32.mrf.mxu0 }
 0x11f   :  { %v1890_v59 = vadd.f32 %v1889_v52, %v1812_v56 }
 0x120   :  { %v1967_v60 = vpop.f32.mrf.mxu0 }
 0x121   :  { %v1968_v62 = vadd.f32 %v1967_v60, %v1890_v59 }
 0x122   :  { %v1969_v63 = vpop.f32.mrf.mxu0 }
 0x123   :  { %v2042_v0 = vadd.f32 %v2041_v58, %v1968_v62 }
 0x125   :  { %v2072_v1 = vmul.f32 -1.442695, %v2042_v0 }
 0x127   :  { %2093 = vpow2.f32 %v2072_v1 }
 0x134   :  { %v2094_v2 = vpop.eup %2093 }
 0x135   :  { %v2048_v3 = vadd.f32 1.0, %v2094_v2 }
 0x137   :  { %2095 = vrcp.f32 %v2048_v3 }
 0x144   :  { %v2096_v4 = vpop.eup %2095 }
 0x145   :  { %2052 = vst.msk [vmem:[#allocation7] sm:$0xff] %vm2051_vm1, %v2096_v4 }
 0x146   :  { %2057 = vsyncadd [#allocation4], 96  ;;  %s2168_s2 = smov [#allocation7]  }
 0x147   :  { %s2058_s25 = sshll.u32 %s2168_s2, 4  ;;  %s2059_s25 = int_to_ptr.vmem [resolvable:$true] %s2058_s25 }
 0x148   :  { %s2137_s26 = scalar_lea.vmem %s2059_s25, 32  ;;  %s2141_s27 = scalar_lea.vmem %s2059_s25, 128 }
 0x149   :  { %p2138_p10 = scmp.ne.s32.totalorder %s2059_s25, %s2137_s26  ;;  %p2142_p11 = scmp.lt.s32.totalorder %s2059_s25, %s2059_s25 }
 0x14a   :  { %p2143_p12 = scmp.lt.s32.totalorder %s2141_s27, %s2137_s26 }
 0x14c   :  { %p2144_p13 = por %p2143_p12, %p2142_p11 }
 0x14e   :  { %p2145_p0 = pnand %p2144_p13, %p2138_p10 }
 0x150   :  { %2148 = shalt.err (!%p2145_p0)
}
 0x151   :  { %s2169_s28 = smov 32   ;;  %s2170_s29 = smov 2  }
 0x152   :  { %2064 = dma.vmem_to_hbm [thread:$0]  %s2059_s25, 32, %s2398_s3, [#allocation4], %s2169_s28, %s2169_s28, %s2170_s29  }
 0x153   :  { %2161 = dma.done.wait [#allocation4], 128  }
 0x154   :  { %2162 = vsyncadd [#allocation4], 4294967168 }
 0x155   :  { %2068 = vsyncpa [#allocation3], 1 }
 0x156   :  { %2069 = vsyncpa [#allocation6], 1 }
 0x157   :  { %2070 = vsyncpa [#allocation4], 1 }

</bundles_post_ra>
